<compile_context>
chip_gen: v5e
topology: v5e:2x2
jax: 0.10.0
libtpu: 0.0.40
codegen_flags: <defaults>
</compile_context>

<pallas_src>
import functools

import jax
import jax.numpy as jnp
from jax.experimental import pallas as pl
from jax.experimental.pallas import tpu as pltpu


def _round_up(x, m):
    return (x + m - 1) // m * m


def _sublane_multiple(itemsize):
    # (8, 128) tile for 32-bit, (16, 128) for 16-bit, (32, 128) for 8-bit.
    return max(8, 8 * (4 // max(1, itemsize)))


def _vmem_capacity_bytes():
    try:
        info = pltpu.get_tpu_info()
        cap = getattr(info, "vmem_capacity_bytes", None)
        if cap:
            return int(cap)
    except Exception:
        pass
    return 64 * 1024 * 1024  # conservative fallback (v7x-sized VMEM)


def _choose_block_volumes(nc, per_vol_bytes, budget_bytes):
    """How many (n, c) volumes to process per grid step."""
    max_b = min(nc, max(1, budget_bytes // per_vol_bytes))
    best_b, best_key = 1, None
    for b in range(max_b, 0, -1):
        steps = -(-nc // b)
        key = (
            1 if (steps >= 2 or nc < 2) else 0,      # let v7x split the grid
            1 if (steps % 2 == 0 or nc < 2) else 0,  # balance 2 TensorCores
            -steps,                                  # amortize ~0.35us/step
            -(steps * b - nc),                       # least partial-block waste
        )
        if best_key is None or key > best_key:
            best_b, best_key = b, key
    return best_b


def _pad3d_kernel(x_ref, o_ref, *, height, width):
    # x_ref: (B, D, H*W)   o_ref: (B, D+2, (H+2)*(W+2))   (lane-dense last dims)
    _, d, _ = x_ref.shape
    w = width
    # Zero-fill the whole padded block with one wide store, then overwrite the
    # interior with H shifted row copies.  All slices are static; stores at
    # lane/sublane offsets lower to ordinary shifted masked stores.
    o_ref[...] = jnp.zeros(o_ref.shape, o_ref.dtype)
    for h in range(height):
        dst = (h + 1) * (w + 2) + 1          # flat (h', w') = (h+1, 1)
        o_ref[:, 1:d + 1, dst:dst + w] = x_ref[:, :, h * w:(h + 1) * w]


def pad3d(x):
    """x: (N, C, D, H, W) → (N, C, D+2, H+2, W+2), zero halo of 1, same dtype."""
    N, C, D, H, W = x.shape
    nc = N * C
    itemsize = jnp.dtype(x.dtype).itemsize
    hw_in = H * W
    hw_out = (H + 2) * (W + 2)

    # Free views of contiguous NCDHW data → lane-dense last dims.
    x_flat = x.reshape(nc, D, hw_in)

    cap = _vmem_capacity_bytes()
    budget = max(cap // 2, 16 * 1024 * 1024)               # block-sizing budget
    vmem_limit = max(min((cap * 3) // 4, 112 * 1024 * 1024), 32 * 1024 * 1024)

    sub = _sublane_multiple(itemsize)
    in_vol = _round_up(D, sub) * _round_up(hw_in, 128) * itemsize
    out_vol = _round_up(D + 2, sub) * _round_up(hw_out, 128) * itemsize
    per_vol = 2 * (in_vol + out_vol)  # 2x: double-buffered input + output
    if per_vol > budget:
        # TODO(synk): tile along D for volumes too large for VMEM (zero halo
        # needs no neighbour exchange, but the +1 offset needs Element-indexed
        # input blocks); not needed for the shapes this module targets.
        raise NotImplementedError(
            f"single padded volume needs {per_vol} bytes (double-buffered), "
            f"exceeding the VMEM budget of {budget} bytes")

    B = _choose_block_volumes(nc, per_vol, budget)
    steps = -(-nc // B)

    kernel = functools.partial(_pad3d_kernel, height=H, width=W)
    bytes_accessed = (nc * D * hw_in + nc * (D + 2) * hw_out) * itemsize

    out_flat = pl.pallas_call(
        kernel,
        out_shape=jax.ShapeDtypeStruct((nc, D + 2, hw_out), x.dtype),
        grid=(steps,),
        in_specs=[pl.BlockSpec((B, D, hw_in), lambda i: (i, 0, 0))],
        out_specs=pl.BlockSpec((B, D + 2, hw_out), lambda i: (i, 0, 0)),
        compiler_params=pltpu.CompilerParams(
            dimension_semantics=("parallel",),
            vmem_limit_bytes=vmem_limit,
        ),
        cost_estimate=pl.CostEstimate(
            flops=0, transcendentals=0, bytes_accessed=bytes_accessed),
    )(x_flat)

    return out_flat.reshape(N, C, D + 2, H + 2, W + 2)


class Pad3D:
    """JAX/Pallas port of the PyTorch Pad3D module."""

    def __init__(self, padding):
        assert len(padding) == 3
        # Interface parity only: the original PyTorch forward() ignores the
        # requested padding amounts and ALWAYS pads by 1 on each side of
        # D, H, W.  We reproduce that behavior exactly.
        self.padding = tuple(
            (p, p) if not hasattr(p, "__iter__") else tuple(p) for p in padding
        )

    def __call__(self, X):
        return pad3d(X)


def _reference_pad3d(x):
    # Pure-JAX reference mirroring the PyTorch concat-of-zeros implementation.
    return jnp.pad(x, ((0, 0), (0, 0), (1, 1), (1, 1), (1, 1)))


if __name__ == "__main__":
    key = jax.random.PRNGKey(0)
    # Small shapes consistent with a 5-D (N, C, D, H, W) conv-style input.
    N, C, D, H, W = 2, 4, 4, 8, 16
    x = jax.random.normal(key, (N, C, D, H, W), dtype=jnp.float32)

    module = Pad3D(padding=(1, 1, 1))
    out = module(x)
    out = jax.block_until_ready(out)

    ref = _reference_pad3d(x)
    assert out.shape == (N, C, D + 2, H + 2, W + 2), out.shape
    assert out.dtype == x.dtype, out.dtype
    assert jnp.allclose(out, ref), "Pallas Pad3D mismatch vs reference"

    print("KERNEL_OK")
</pallas_src>

<mosaic_0001>
module attributes {stable_mosaic.version = 11 : i64} {
  func.func @_pad3d_kernel(%arg0: i32, %arg1: memref<4x4x128xf32, #tpu.memory_space<vmem>>, %arg2: memref<4x6x180xf32, #tpu.memory_space<vmem>>) attributes {dimension_semantics = [#tpu.dimension_semantics<parallel>], iteration_bounds = array<i64: 2>, scalar_prefetch = 0 : i64, scratch_operands = 0 : i64, tpu.core_type = #tpu.core_type<tc>, window_params = [{transform_indices = @transform_0, window_bounds = array<i64: 4, 4, 128>}, {transform_indices = @transform_1, window_bounds = array<i64: 4, 6, 180>}]} {
    %cst = arith.constant 0.000000e+00 : f32
    %0 = vector.broadcast %cst : f32 to vector<4x6x180xf32>
    %c0 = arith.constant 0 : index
    %c0_0 = arith.constant 0 : index
    %c0_1 = arith.constant 0 : index
    %1 = vector.load %arg2[%c0, %c0_0, %c0_1] : memref<4x6x180xf32, #tpu.memory_space<vmem>>, vector<4x6x180xf32>
    tpu.vector_store %arg2[%c0, %c0_0, %c0_1], %0 {strides = array<i32>} : memref<4x6x180xf32, #tpu.memory_space<vmem>>, vector<4x6x180xf32>,
    %c0_2 = arith.constant 0 : index
    %c0_3 = arith.constant 0 : index
    %c0_4 = arith.constant 0 : index
    %2 = vector.load %arg1[%c0_2, %c0_3, %c0_4] : memref<4x4x128xf32, #tpu.memory_space<vmem>>, vector<4x4x16xf32>
    %c0_5 = arith.constant 0 : index
    %c1 = arith.constant 1 : index
    %c19 = arith.constant 19 : index
    %3 = vector.load %arg2[%c0_5, %c1, %c19] : memref<4x6x180xf32, #tpu.memory_space<vmem>>, vector<4x4x16xf32>
    tpu.vector_store %arg2[%c0_5, %c1, %c19], %2 {strides = array<i32>} : memref<4x6x180xf32, #tpu.memory_space<vmem>>, vector<4x4x16xf32>,
    %c0_6 = arith.constant 0 : index
    %c0_7 = arith.constant 0 : index
    %c16 = arith.constant 16 : index
    %4 = vector.load %arg1[%c0_6, %c0_7, %c16] : memref<4x4x128xf32, #tpu.memory_space<vmem>>, vector<4x4x16xf32>
    %c0_8 = arith.constant 0 : index
    %c1_9 = arith.constant 1 : index
    %c37 = arith.constant 37 : index
    %5 = vector.load %arg2[%c0_8, %c1_9, %c37] : memref<4x6x180xf32, #tpu.memory_space<vmem>>, vector<4x4x16xf32>
    tpu.vector_store %arg2[%c0_8, %c1_9, %c37], %4 {strides = array<i32>} : memref<4x6x180xf32, #tpu.memory_space<vmem>>, vector<4x4x16xf32>,
    %c0_10 = arith.constant 0 : index
    %c0_11 = arith.constant 0 : index
    %c32 = arith.constant 32 : index
    %6 = vector.load %arg1[%c0_10, %c0_11, %c32] : memref<4x4x128xf32, #tpu.memory_space<vmem>>, vector<4x4x16xf32>
    %c0_12 = arith.constant 0 : index
    %c1_13 = arith.constant 1 : index
    %c55 = arith.constant 55 : index
    %7 = vector.load %arg2[%c0_12, %c1_13, %c55] : memref<4x6x180xf32, #tpu.memory_space<vmem>>, vector<4x4x16xf32>
    tpu.vector_store %arg2[%c0_12, %c1_13, %c55], %6 {strides = array<i32>} : memref<4x6x180xf32, #tpu.memory_space<vmem>>, vector<4x4x16xf32>,
    %c0_14 = arith.constant 0 : index
    %c0_15 = arith.constant 0 : index
    %c48 = arith.constant 48 : index
    %8 = vector.load %arg1[%c0_14, %c0_15, %c48] : memref<4x4x128xf32, #tpu.memory_space<vmem>>, vector<4x4x16xf32>
    %c0_16 = arith.constant 0 : index
    %c1_17 = arith.constant 1 : index
    %c73 = arith.constant 73 : index
    %9 = vector.load %arg2[%c0_16, %c1_17, %c73] : memref<4x6x180xf32, #tpu.memory_space<vmem>>, vector<4x4x16xf32>
    tpu.vector_store %arg2[%c0_16, %c1_17, %c73], %8 {strides = array<i32>} : memref<4x6x180xf32, #tpu.memory_space<vmem>>, vector<4x4x16xf32>,
    %c0_18 = arith.constant 0 : index
    %c0_19 = arith.constant 0 : index
    %c64 = arith.constant 64 : index
    %10 = vector.load %arg1[%c0_18, %c0_19, %c64] : memref<4x4x128xf32, #tpu.memory_space<vmem>>, vector<4x4x16xf32>
    %c0_20 = arith.constant 0 : index
    %c1_21 = arith.constant 1 : index
    %c91 = arith.constant 91 : index
    %11 = vector.load %arg2[%c0_20, %c1_21, %c91] : memref<4x6x180xf32, #tpu.memory_space<vmem>>, vector<4x4x16xf32>
    tpu.vector_store %arg2[%c0_20, %c1_21, %c91], %10 {strides = array<i32>} : memref<4x6x180xf32, #tpu.memory_space<vmem>>, vector<4x4x16xf32>,
    %c0_22 = arith.constant 0 : index
    %c0_23 = arith.constant 0 : index
    %c80 = arith.constant 80 : index
    %12 = vector.load %arg1[%c0_22, %c0_23, %c80] : memref<4x4x128xf32, #tpu.memory_space<vmem>>, vector<4x4x16xf32>
    %c0_24 = arith.constant 0 : index
    %c1_25 = arith.constant 1 : index
    %c109 = arith.constant 109 : index
    %13 = vector.load %arg2[%c0_24, %c1_25, %c109] : memref<4x6x180xf32, #tpu.memory_space<vmem>>, vector<4x4x16xf32>
    tpu.vector_store %arg2[%c0_24, %c1_25, %c109], %12 {strides = array<i32>} : memref<4x6x180xf32, #tpu.memory_space<vmem>>, vector<4x4x16xf32>,
    %c0_26 = arith.constant 0 : index
    %c0_27 = arith.constant 0 : index
    %c96 = arith.constant 96 : index
    %14 = vector.load %arg1[%c0_26, %c0_27, %c96] : memref<4x4x128xf32, #tpu.memory_space<vmem>>, vector<4x4x16xf32>
    %c0_28 = arith.constant 0 : index
    %c1_29 = arith.constant 1 : index
    %c127 = arith.constant 127 : index
    %15 = vector.load %arg2[%c0_28, %c1_29, %c127] : memref<4x6x180xf32, #tpu.memory_space<vmem>>, vector<4x4x16xf32>
    tpu.vector_store %arg2[%c0_28, %c1_29, %c127], %14 {strides = array<i32>} : memref<4x6x180xf32, #tpu.memory_space<vmem>>, vector<4x4x16xf32>,
    %c0_30 = arith.constant 0 : index
    %c0_31 = arith.constant 0 : index
    %c112 = arith.constant 112 : index
    %16 = vector.load %arg1[%c0_30, %c0_31, %c112] : memref<4x4x128xf32, #tpu.memory_space<vmem>>, vector<4x4x16xf32>
    %c0_32 = arith.constant 0 : index
    %c1_33 = arith.constant 1 : index
    %c145 = arith.constant 145 : index
    %17 = vector.load %arg2[%c0_32, %c1_33, %c145] : memref<4x6x180xf32, #tpu.memory_space<vmem>>, vector<4x4x16xf32>
    tpu.vector_store %arg2[%c0_32, %c1_33, %c145], %16 {strides = array<i32>} : memref<4x6x180xf32, #tpu.memory_space<vmem>>, vector<4x4x16xf32>,
    return
  }
  func.func @transform_0(%arg0: i32) -> (i32, i32, i32) {
    %c0_i32 = arith.constant 0 : i32
    %c0_i32_0 = arith.constant 0 : i32
    %c0_i32_1 = arith.constant 0 : i32
    return %arg0, %c0_i32, %c0_i32_0 : i32, i32, i32
  }
  func.func @transform_1(%arg0: i32) -> (i32, i32, i32) {
    %c0_i32 = arith.constant 0 : i32
    %c0_i32_0 = arith.constant 0 : i32
    %c0_i32_1 = arith.constant 0 : i32
    return %arg0, %c0_i32, %c0_i32_0 : i32, i32, i32
  }
}

</mosaic_0001>

<bundles_post_ra>
// kernel: tpu_custom_call.1
= control target key start
LH: loop header
LB: loop body
LE: loop exit
PB: predicated region body
PF: predicated region fallthrough
CT: control target
= control target key end

     0   :  { %6 = vsyncpa [#allocation3], 0  ;;  %s798_s0 = inlined_call_operand.hbm [shape: f32[8,4,128], index: 0, kind: input, shape index: {}]   ;;  %s799_s1 = inlined_call_operand.vmem [shape: f32[8,6,180], index: 1, kind: output, shape index: {}]  }
   0x1   :  { %8 = vsyncpa [#allocation3 + $0x1], 0  ;;  %s611_s6 = smov 0   ;;  %s613_s7 = smov 0  }
   0x2   :  { %s615_s8 = smov 0   ;;  %s617_s9 = smov 0  }
   0x3 LB: > { %s458_s10 = sadd.s32 4294967295, %s588_s9   ;;  %s631_s11 = sadd.s32 1, %s588_s9   ;;  %s588_s9 = sphi %s617_s9, %s806_s9   ;;  %s584_s8 = sphi %s615_s8, %s805_s8   ;;  %s580_s7 = sphi %s613_s7, %s804_s7   ;;  %s576_s6 = sphi %s611_s6, %s803_s6  }
   0x4   : > { %s18_s12 = ssub.s32 %s588_s9, %s631_s11  ;;  %s21_s13 = sadd.s32 1, %s584_s8 }
   0x5   : > { %p19_p0 = scmp.eq.s32.totalorder %s18_s12, 0  ;;  %p28_p1 = scmp.ne.s32.totalorder %s584_s8, %s580_s7 }
   0x6   : > { %p29_p2 = scmp.eq.s32.totalorder %s588_s9, 0  ;;  %p34_p3 = scmp.ne.s32.totalorder %s580_s7, %s576_s6 }
   0x7   : > { %s641_s14 = scalar_select %p19_p0, %s584_s8, %s21_s13  }
   0x8   : > { %p643_p4 = por %p29_p2, %p28_p1  ;;  %p35_p5 = scmp.eq.s32.totalorder %s458_s10, 0 }
   0x9   : > { %p480_p6 = scmp.lt.s32.totalorder %s588_s9, 2  ;;  %s84_s17 = sand.u32 1, %s584_s8  }
   0xa   : > { %p650_p7 = por %p35_p5, %p34_p3  ;;  %s462_s18 = sshll.u32 %s84_s17, 4 }
   0xb   : > { %s472_s19 = sshll.u32 %s588_s9, 4  ;;  %s88_s23 = scalar_lea.vmem [#allocation2], %s462_s18 }
   0xc   : > { %s93_s22 = scalar_lea.hbm %s798_s0, %s472_s19  ;;  %s96_s24 = sshll.u32 %s88_s23, 4  ;;  %s97_s24 = int_to_ptr.vmem [resolvable:$true] %s96_s24 }
   0xd   : > { %s94_s25 = sshll.u32 %s93_s22, 4  ;;  %p661_p8 = pnand %p480_p6, %p643_p4  ;;  %s95_s25 = int_to_ptr.hbm [resolvable:$true] %s94_s25 }
   0xe   : > { %p465_p9 = scmp.ge.s32.totalorder %s588_s9, 1  ;;  %s85_s27 = scalar_lea.sflag [#allocation3], %s84_s17 }
   0xf   : > { %s524_s28 = sshra.s32 %s95_s25, 4  ;;  %p528_p11 = pneg %p661_p8  ;;  %s525_s28 = int_to_ptr.hbm [resolvable:$true] %s524_s28 }
  0x10   : > { %s526_s29 = scalar_lea.hbm %s525_s28, 16  ;;  %s531_s3 = scalar_lea.hbm %s798_s0, 32 }
  0x11   : > { %p527_p10 = scmp.ne.s32.totalorder %s525_s28, %s526_s29  ;;  %p532_p0 = scmp.lt.s32.totalorder %s525_s28, %s798_s0 }
  0x12   : > { %p533_p1 = scmp.lt.s32.totalorder %s531_s3, %s526_s29 }
  0x13   : > { %p529_p12 = pnand %p528_p11, %p527_p10 }
  0x14   : > { %p534_p2 = por %p533_p1, %p532_p0 }
  0x15   : > { %p530_p13 = pneg %p529_p12 }
  0x17   : > { %p535_p3 = pnand %p534_p2, %p530_p13 }
  0x19   : > { %538 = shalt.err (!%p535_p3)
}
  0x1a   : > { %s590_s6 = smov 64   ;;  %s591_s12 = smov 4  }
  0x1b   : > { %479 = dma.hbm_to_vmem [thread:$0]  (!%p661_p8), %s95_s25, 256, %s97_s24, %s85_s27, %s590_s6, %s590_s6, %s591_s12  }
  0x1c   : > { %p104_p4 = scmp.lt.s32.totalorder %s588_s9, 3 }
  0x1e   : > { %p105_p5 = pnand %p465_p9, %p104_p4 }
  0x1f   : > { %s110_s13 = sand.u32 (!%p105_p5), 1, %s580_s7  }
  0x20   : > { %108 = sbr.rel (%p105_p5) target bundleno = 238 (0xee), region = 24  ;;  %s466_s15 = sshll.u32 (!%p105_p5), %s110_s13, 4 }
  0x21   : > { %s111_s17 = scalar_lea.sflag (!%p105_p5), [#allocation3], %s110_s13  ;;  %s680_s18 = scalar_lea.vmem (!%p105_p5), [#allocation2], %s466_s15 }
  0x25   : > { %571 = dma.done.wait (%p650_p7), %s111_s17, 256  }
  0x26   : > { %573 = vsyncadd (%p650_p7), %s111_s17, 4294967040  ;;  %v152_v0 = vld [vmem:[%s680_s18] sm:$0xf]  ;;  %v154_v1 = vld [vmem:[%s680_s18 + $0x8] sm:$0xf]  ;;  %s592_s19 = smov 19  }
  0x27   : > { %v160_v2 = vrot.slane %v152_v0, 7  ;;  %v162_v3 = vrot.slane %v154_v1, 7  ;;  %v181_v4 = vld [vmem:[%s680_s18] sm:$0xf]  ;;  %v153_v5 = vld [vmem:[%s680_s18 + $0x4] sm:$0xf] }
  0x28   : > { %v155_v6 = vld [vmem:[%s680_s18 + $0xc] sm:$0xf]  ;;  %v189_v7 = vrot.slane %v181_v4, 7  ;;  %s593_s16 = smov 21   ;;  %v161_v8 = vrot.slane %v153_v5, 7  ;;  %s594_s20 = smov 23  }
  0x29   : > { %164 = vrot.lane.b32.xlu0 %v160_v2, %s592_s19  ;;  %168 = vrot.lane.b32.xlu1 %v162_v3, %s592_s19  ;;  %v163_v9 = vrot.slane %v155_v6, 7  ;;  %v182_v10 = vld [vmem:[%s680_s18 + $0x4] sm:$0xf]  ;;  %v183_v12 = vld [vmem:[%s680_s18 + $0x8] sm:$0xf]  ;;  %s595_s21 = smov 25  }
  0x2a   : > { %193 = vrot.lane.b32.xlu2 %v189_v7, %s593_s16  ;;  %v190_v11 = vrot.slane %v182_v10, 7  ;;  %v184_v13 = vld [vmem:[%s680_s18 + $0xc] sm:$0xf]  ;;  %v191_v14 = vrot.slane %v183_v12, 7  ;;  %v210_v16 = vld [vmem:[%s680_s18] sm:$0xf] }
  0x2b   : > { %v192_v15 = vrot.slane %v184_v13, 7  ;;  %v218_v17 = vrot.slane %v210_v16, 7  ;;  %v211_v18 = vld [vmem:[%s680_s18 + $0x4] sm:$0xf]  ;;  %v212_v19 = vld [vmem:[%s680_s18 + $0x8] sm:$0xf] }
  0x2c   : > { %v219_v20 = vrot.slane %v211_v18, 7  ;;  %v220_v21 = vrot.slane %v212_v19, 7  ;;  %v213_v22 = vld [vmem:[%s680_s18 + $0xc] sm:$0xf]  ;;  %v239_v24 = vld [vmem:[%s680_s18] sm:$0xf] }
  0x2d   : > { %v221_v23 = vrot.slane %v213_v22, 7  ;;  %v240_v25 = vld [vmem:[%s680_s18 + $0x4] sm:$0xf]  ;;  %v247_v26 = vrot.slane %v239_v24, 7  ;;  %v241_v28 = vld [vmem:[%s680_s18 + $0x8] sm:$0xf] }
  0x2e   : > { %v248_v27 = vrot.slane %v240_v25, 7  ;;  %v249_v29 = vrot.slane %v241_v28, 7  ;;  %s467_s22 = sshll.u32 %s458_s10, 2  ;;  %v242_v30 = vld [vmem:[%s680_s18 + $0xc] sm:$0xf]  ;;  %s596_s23 = smov 27  }
  0x2f   : > { %v268_v31 = vld [vmem:[%s680_s18] sm:$0xf]  ;;  %p137_p6 = scmp.lt.s32.totalorder %s467_s22, 7  ;;  %v250_v32 = vrot.slane %v242_v30, 7  ;;  %v269_v34 = vld [vmem:[%s680_s18 + $0x4] sm:$0xf] }
  0x30   : > { %v276_v33 = vrot.slane %v268_v31, 7  ;;  %v277_v35 = vrot.slane %v269_v34, 7  ;;  %v270_v36 = vld [vmem:[%s680_s18 + $0x8] sm:$0xf]  ;;  %v271_v37 = vld [vmem:[%s680_s18 + $0xc] sm:$0xf] }
  0x31   : > { %166 = vrot.lane.b32.xlu0 %v161_v8, %s592_s19  ;;  %170 = vrot.lane.b32.xlu1 %v163_v9, %s592_s19  ;;  %s808_s22 = smov (!%p137_p6, %s467_s22), 7  ;;  %v278_v38 = vrot.slane %v270_v36, 7  ;;  %v279_v39 = vrot.slane %v271_v37, 7  ;;  %v297_v40 = vld [vmem:[%s680_s18] sm:$0xf]  ;;  %v597_v44 = vmov 0.0  }
  0x32   : > { %195 = vrot.lane.b32.xlu2 %v190_v11, %s593_s16  ;;  %s473_s9 = sshll.u32 %s808_s22, 4  ;;  %v305_v41 = vrot.slane %v297_v40, 7  ;;  %v326_v42 = vld [vmem:[%s680_s18] sm:$0xf]  ;;  %v298_v43 = vld [vmem:[%s680_s18 + $0x4] sm:$0xf] }
  0x33   : > { %s712_s25 = scalar_lea.vmem %s799_s1, %s473_s9  ;;  %s598_s26 = smov 29   ;;  %v334_v45 = vrot.slane %v326_v42, 7  ;;  %v306_v46 = vrot.slane %v298_v43, 7  ;;  %v327_v47 = vld [vmem:[%s680_s18 + $0x4] sm:$0xf]  ;;  %vm176_vm0 = vcmask 282777  }
  0x34   : > { %143 = vst [vmem:[%s712_s25] sm:$0x3f] %v597_v44  ;;  %v335_v48 = vrot.slane %v327_v47, 7  ;;  %s599_s27 = smov 31   ;;  %v299_v49 = vld [vmem:[%s680_s18 + $0x8] sm:$0xf]  ;;  %s600_s28 = smov 33  }
  0x35   : > { %146 = vst [vmem:[%s712_s25 + $0x10] sm:$0x3f] %v597_v44  ;;  %v328_v50 = vld [vmem:[%s680_s18 + $0x8] sm:$0xf]  ;;  %v307_v51 = vrot.slane %v299_v49, 7  ;;  %vm205_vm1 = vcmask 430377  }
  0x36   : > { %148 = vst [vmem:[%s712_s25 + $0x20] sm:$0x3f] %v597_v44  ;;  %v336_v52 = vrot.slane %v328_v50, 7  ;;  %v300_v53 = vld [vmem:[%s680_s18 + $0xc] sm:$0xf]  ;;  %vm234_vm2 = vcmask 577977  }
  0x37   : > { %150 = vst [vmem:[%s712_s25 + $0x30] sm:$0x3f] %v597_v44  ;;  %v308_v54 = vrot.slane %v300_v53, 7  ;;  %v329_v55 = vld [vmem:[%s680_s18 + $0xc] sm:$0xf]  ;;  %vm144_vm3 = vcmask 422912  }
  0x38   : > { %v360_v56 = vld [vmem:[%s680_s18] sm:$0xf]  ;;  %v337_v57 = vrot.slane %v329_v55, 7  ;;  %v361_v59 = vld [vmem:[%s680_s18 + $0x4] sm:$0xf]  ;;  %vm263_vm4 = vcmask 725577  }
  0x39   : > { %197 = vrot.lane.b32.xlu0 %v191_v14, %s593_s16  ;;  %199 = vrot.lane.b32.xlu1 %v192_v15, %s593_s16  ;;  %v368_v58 = vrot.slane %v360_v56, 7  ;;  %v369_v60 = vrot.slane %v361_v59, 7  ;;  %v362_v61 = vld [vmem:[%s680_s18 + $0x8] sm:$0xf]  ;;  %v363_v62 = vld [vmem:[%s680_s18 + $0xc] sm:$0xf] }
  0x3a   : > { %222 = vrot.lane.b32.xlu2 %v218_v17, %s594_s20  ;;  %v370_v63 = vrot.slane %v362_v61, 7  ;;  %v371_v0 = vrot.slane %v363_v62, 7  ;;  %145 = vst.msk [vmem:[%s712_s25 + $0x8] sm:$0x3f] %vm144_vm3, %v597_v44  ;;  %vm292_vm5 = vcmask 873177   ;;  %vm321_vm6 = vcmask 1020777  }
  0x3b   : > { %147 = vst.msk [vmem:[%s712_s25 + $0x18] sm:$0x3f] %vm144_vm3, %v597_v44  ;;  %vm352_vm7 = vcmask 118785   ;;  %vm350_vm8 = vcmask 1045497   ;;  %vm384_vm9 = vcmask 266377  }
  0x3c   : > { %149 = vst.msk [vmem:[%s712_s25 + $0x28] sm:$0x3f] %vm144_vm3, %v597_v44 }
  0x3d   : > { %151 = vst.msk [vmem:[%s712_s25 + $0x38] sm:$0x3f] %vm144_vm3, %v597_v44 }
  0x41   : > { %224 = vrot.lane.b32.xlu0 %v219_v20, %s594_s20  ;;  %226 = vrot.lane.b32.xlu1 %v220_v21, %s594_s20 }
  0x42   : > { %228 = vrot.lane.b32.xlu2 %v221_v23, %s594_s20 }
  0x49   : > { %251 = vrot.lane.b32.xlu0 %v247_v26, %s595_s21  ;;  %253 = vrot.lane.b32.xlu1 %v248_v27, %s595_s21 }
  0x4a   : > { %255 = vrot.lane.b32.xlu2 %v249_v29, %s595_s21 }
  0x51   : > { %257 = vrot.lane.b32.xlu0 %v250_v32, %s595_s21  ;;  %280 = vrot.lane.b32.xlu1 %v276_v33, %s596_s23 }
  0x52   : > { %282 = vrot.lane.b32.xlu2 %v277_v35, %s596_s23 }
  0x59   : > { %284 = vrot.lane.b32.xlu0 %v278_v38, %s596_s23  ;;  %286 = vrot.lane.b32.xlu1 %v279_v39, %s596_s23 }
  0x5a   : > { %309 = vrot.lane.b32.xlu2 %v305_v41, %s598_s26 }
  0x61   : > { %338 = vrot.lane.b32.xlu0 %v334_v45, %s599_s27  ;;  %311 = vrot.lane.b32.xlu1 %v306_v46, %s598_s26 }
  0x62   : > { %340 = vrot.lane.b32.xlu2 %v335_v48, %s599_s27 }
  0x69   : > { %313 = vrot.lane.b32.xlu0 %v307_v51, %s598_s26  ;;  %342 = vrot.lane.b32.xlu1 %v336_v52, %s599_s27 }
  0x6a   : > { %315 = vrot.lane.b32.xlu2 %v308_v54, %s598_s26 }
  0x71   : > { %344 = vrot.lane.b32.xlu0 %v337_v57, %s599_s27  ;;  %372 = vrot.lane.b32.xlu1 %v368_v58, %s600_s28 }
  0x72   : > { %374 = vrot.lane.b32.xlu2 %v369_v60, %s600_s28 }
  0x79   : > { %376 = vrot.lane.b32.xlu0 %v370_v63, %s600_s28  ;;  %378 = vrot.lane.b32.xlu1 %v371_v0, %s600_s28 }
  0x84   : > { %v194_v1 = vpop.permute.xlu2 %193 }
  0x8c   : > { %v196_v2 = vpop.permute.xlu2 %195 }
  0x94   : > { %v223_v5 = vpop.permute.xlu2 %222 }
  0x9b   : > { %v165_v3 = vpop.permute.xlu0 %164  ;;  %v169_v4 = vpop.permute.xlu1 %168 }
  0x9c   : > { %177 = vst.msk [vmem:[%s712_s25] sm:$0x1e] %vm176_vm0, %v165_v3  ;;  %v229_v8 = vpop.permute.xlu2 %228 }
  0x9d   : > { %179 = vst.msk [vmem:[%s712_s25 + $0x20] sm:$0x1e] %vm176_vm0, %v169_v4 }
  0x9e   : > { %206 = vst.msk [vmem:[%s712_s25] sm:$0x1e] %vm205_vm1, %v194_v1 }
  0x9f   : > { %235 = vst.msk [vmem:[%s712_s25] sm:$0x1e] %vm234_vm2, %v223_v5 }
  0xa3   : > { %v167_v6 = vpop.permute.xlu0 %166  ;;  %v171_v7 = vpop.permute.xlu1 %170 }
  0xa4   : > { %178 = vst.msk [vmem:[%s712_s25 + $0x10] sm:$0x1e] %vm176_vm0, %v167_v6  ;;  %v256_v11 = vpop.permute.xlu2 %255 }
  0xa5   : > { %180 = vst.msk [vmem:[%s712_s25 + $0x30] sm:$0x1e] %vm176_vm0, %v171_v7 }
  0xa6   : > { %207 = vst.msk [vmem:[%s712_s25 + $0x10] sm:$0x1e] %vm205_vm1, %v196_v2 }
  0xab   : > { %v198_v9 = vpop.permute.xlu0 %197  ;;  %v200_v10 = vpop.permute.xlu1 %199 }
  0xac   : > { %208 = vst.msk [vmem:[%s712_s25 + $0x20] sm:$0x1e] %vm205_vm1, %v198_v9  ;;  %v283_v16 = vpop.permute.xlu2 %282 }
  0xad   : > { %209 = vst.msk [vmem:[%s712_s25 + $0x30] sm:$0x1e] %vm205_vm1, %v200_v10 }
  0xae   : > { %238 = vst.msk [vmem:[%s712_s25 + $0x30] sm:$0x1e] %vm234_vm2, %v229_v8 }
  0xb3   : > { %v225_v12 = vpop.permute.xlu0 %224  ;;  %v227_v13 = vpop.permute.xlu1 %226 }
  0xb4   : > { %236 = vst.msk [vmem:[%s712_s25 + $0x10] sm:$0x1e] %vm234_vm2, %v225_v12  ;;  %v310_v19 = vpop.permute.xlu2 %309 }
  0xb5   : > { %237 = vst.msk [vmem:[%s712_s25 + $0x20] sm:$0x1e] %vm234_vm2, %v227_v13 }
  0xb6   : > { %266 = vst.msk [vmem:[%s712_s25 + $0x20] sm:$0x1e] %vm263_vm4, %v256_v11 }
  0xbb   : > { %v252_v14 = vpop.permute.xlu0 %251  ;;  %v254_v15 = vpop.permute.xlu1 %253 }
  0xbc   : > { %264 = vst.msk [vmem:[%s712_s25] sm:$0x1e] %vm263_vm4, %v252_v14  ;;  %v341_v22 = vpop.permute.xlu2 %340 }
  0xbd   : > { %265 = vst.msk [vmem:[%s712_s25 + $0x10] sm:$0x1e] %vm263_vm4, %v254_v15 }
  0xbe   : > { %294 = vst.msk [vmem:[%s712_s25 + $0x10] sm:$0x1e] %vm292_vm5, %v283_v16 }
  0xbf   : > { %355 = vst.msk [vmem:[%s712_s25 + $0x18] sm:$0x1e] %vm352_vm7, %v341_v22 }
  0xc3   : > { %v258_v17 = vpop.permute.xlu0 %257  ;;  %v281_v18 = vpop.permute.xlu1 %280 }
  0xc4   : > { %267 = vst.msk [vmem:[%s712_s25 + $0x30] sm:$0x1e] %vm263_vm4, %v258_v17  ;;  %v316_v25 = vpop.permute.xlu2 %315 }
  0xc5   : > { %293 = vst.msk [vmem:[%s712_s25] sm:$0x1e] %vm292_vm5, %v281_v18 }
  0xc6   : > { %322 = vst.msk [vmem:[%s712_s25] sm:$0x1e] %vm321_vm6, %v310_v19 }
  0xcb   : > { %v285_v20 = vpop.permute.xlu0 %284  ;;  %v287_v21 = vpop.permute.xlu1 %286 }
  0xcc   : > { %295 = vst.msk [vmem:[%s712_s25 + $0x20] sm:$0x1e] %vm292_vm5, %v285_v20  ;;  %v375_v30 = vpop.permute.xlu2 %374 }
  0xcd   : > { %296 = vst.msk [vmem:[%s712_s25 + $0x30] sm:$0x1e] %vm292_vm5, %v287_v21 }
  0xce   : > { %325 = vst.msk [vmem:[%s712_s25 + $0x30] sm:$0x1e] %vm321_vm6, %v316_v25 }
  0xcf   : > { %386 = vst.msk [vmem:[%s712_s25 + $0x18] sm:$0x1e] %vm384_vm9, %v375_v30 }
  0xd3   : > { %v339_v23 = vpop.permute.xlu0 %338  ;;  %v312_v24 = vpop.permute.xlu1 %311 }
  0xd4   : > { %353 = vst.msk [vmem:[%s712_s25 + $0x8] sm:$0x1e] %vm352_vm7, %v339_v23 }
  0xd5   : > { %323 = vst.msk [vmem:[%s712_s25 + $0x10] sm:$0x1e] %vm321_vm6, %v312_v24 }
  0xd6   : > { %351 = vst.msk [vmem:[%s712_s25] sm:$0x1e] %vm350_vm8, %v339_v23 }
  0xd7   : > { %354 = vst.msk [vmem:[%s712_s25 + $0x10] sm:$0x1e] %vm350_vm8, %v341_v22 }
  0xdb   : > { %v314_v26 = vpop.permute.xlu0 %313  ;;  %v343_v27 = vpop.permute.xlu1 %342 }
  0xdc   : > { %324 = vst.msk [vmem:[%s712_s25 + $0x20] sm:$0x1e] %vm321_vm6, %v314_v26 }
  0xdd   : > { %356 = vst.msk [vmem:[%s712_s25 + $0x20] sm:$0x1e] %vm350_vm8, %v343_v27 }
  0xde   : > { %357 = vst.msk [vmem:[%s712_s25 + $0x28] sm:$0x1e] %vm352_vm7, %v343_v27 }
  0xe3   : > { %v345_v28 = vpop.permute.xlu0 %344  ;;  %v373_v29 = vpop.permute.xlu1 %372 }
  0xe4   : > { %358 = vst.msk [vmem:[%s712_s25 + $0x30] sm:$0x1e] %vm350_vm8, %v345_v28 }
  0xe5   : > { %359 = vst.msk [vmem:[%s712_s25 + $0x38] sm:$0x1e] %vm352_vm7, %v345_v28 }
  0xe6   : > { %385 = vst.msk [vmem:[%s712_s25 + $0x8] sm:$0x1e] %vm384_vm9, %v373_v29 }
  0xeb   : > { %v377_v31 = vpop.permute.xlu0 %376  ;;  %v379_v32 = vpop.permute.xlu1 %378 }
  0xec   : > { %387 = vst.msk [vmem:[%s712_s25 + $0x28] sm:$0x1e] %vm384_vm9, %v377_v31 }
  0xed   : > { %388 = vst.msk [vmem:[%s712_s25 + $0x38] sm:$0x1e] %vm384_vm9, %v379_v32 }
  0xee PF: > { %p11_p7 = scmp.ge.s32.totalorder %s631_s11, 4   ;;  %s803_s6 = smov %s580_s7 }
  0xef   : > { %s804_s7 = smov %s584_s8  ;;  %s805_s8 = smov %s641_s14 }
  0xf0   : > { %s806_s9 = smov %s631_s11  ;;  %13 = sbr.rel (!%p11_p7) target bundleno = 3 (0x3), region = 64 }
  0xf5   :  { %413 = vsyncpa [#allocation3], 1 }
  0xf6   :  { %415 = vsyncpa [#allocation3 + $0x1], 1 }

</bundles_post_ra>
